<compile_context>
chip_gen: v7x
topology: tpu7x:2x2x1
jax: 0.10.0
libtpu: 0.0.40
codegen_flags: <defaults>
</compile_context>

<pallas_src>
import functools

import jax
import jax.numpy as jnp
import numpy as np
from jax import lax
from jax.experimental import pallas as pl
from jax.experimental.pallas import tpu as pltpu


def gcm_kernel(x_ref, w_ref, b_ref, g_ref, o_ref, *, mul_dtype, unroll_static):
    # x_ref: (Bt, L, Vt)  inputs
    # w_ref: (L,  L, Vt)  weight[i, o, v]  (resident across the batch sweep)
    # b_ref: (L,  Vt)     bias[o, v]
    # g_ref: (1,  Vt)     tanh(gating)[v]  (precomputed, f32)
    # o_ref: (Bt, L, Vt)
    Bt, L, Vt = o_ref.shape

    def fma(i, acc):
        # Per-slab loads straight from the refs; cast at use.  Only the f32
        # accumulator stays live as a whole-tile value.
        xi = x_ref[:, pl.ds(i, 1), :].astype(mul_dtype)      # (Bt, 1, Vt)
        wi = w_ref[i].astype(mul_dtype)                      # (L, Vt)
        # TODO(synk): a stride-0 sublane-broadcast load
        # (x_ref[:, pl.ds(i, L, stride=0), :]) would move this sublane
        # broadcast off the XLU onto the vld slot, but pl.Slice rejects
        # stride < 1 on some jax versions, so the safe jnp broadcast is kept.
        return acc + (xi * wi[None, :, :]).astype(jnp.float32)

    acc = jnp.zeros((Bt, L, Vt), jnp.float32)
    if unroll_static:
        # Small window_len: fully unrolled static loop.
        for i in range(L):
            acc = fma(i, acc)
    else:
        # Large window_len: bound live ranges (avoid vreg spills) while
        # keeping scheduler visibility via partial unroll.
        acc = lax.fori_loop(0, L, fma, acc, unroll=4)

    x = x_ref[...].astype(jnp.float32)
    g = g_ref[...].astype(jnp.float32)                        # (1, Vt)
    b = b_ref[...].astype(jnp.float32)                        # (L, Vt)
    out = x + g[None, :, :] * (acc + b[None, :, :])
    o_ref[...] = out.astype(o_ref.dtype)


def _physical_vmem_bytes():
    try:
        info = pltpu.get_tpu_info()
        cap = getattr(info, "vmem_capacity_bytes", None)
        if cap:
            return int(cap)
    except Exception:
        pass
    return 64 * 1024 * 1024          # conservative default (v7x-sized)


def _is_v5e():
    try:
        kind = jax.devices()[0].device_kind.lower()
        return ("v5 lite" in kind) or ("v5e" in kind) or ("v5litepod" in kind)
    except Exception:
        return False


def _pick_v_tile(v_pad):
    # Largest lane tile <= 512 that is a multiple of 128 and divides v_pad.
    best, cand = 128, 128
    while cand <= min(v_pad, 512):
        if v_pad % cand == 0:
            best = cand
        cand += 128
    return best


def _footprint_bytes(b_tile, L, v_tile, io_bytes):
    blk = b_tile * L * v_tile
    x_out = 2 * 2 * blk * io_bytes            # double-buffered x and out blocks
    w = 2 * L * L * v_tile * io_bytes         # weight block (double-buffered)
    bias_g = 2 * (L + 1) * v_tile * 4         # bias + gating blocks
    temps = 3 * blk * 4                       # f32 accumulator + working temps
    return x_out + w + bias_g + temps


def _pick_b_tile(B, L, v_tile, io_bytes, budget_bytes):
    best = 1
    for d in range(1, B + 1):
        if B % d == 0 and _footprint_bytes(d, L, v_tile, io_bytes) <= budget_bytes:
            best = d
    return best


def gcm_forward(x, weight, gating, bias):
    """x: (B, L, V); weight: (L, L, V) or (L, L); gating: (V,); bias: (L, V)."""
    B, L, V = x.shape
    if weight.ndim == 2:        # var_wise=False: weight shared across variables
        weight = jnp.broadcast_to(weight[:, :, None], (L, L, V))

    # tanh(gating): only V scalars — keep it in f32 (no reason to narrow).
    g_t = jnp.tanh(gating.astype(jnp.float32)).reshape(1, V)

    # Pad V up to a multiple of 128 so every block is lane-dense; the padded
    # lanes produce zeros and are sliced off below.
    V_pad = ((V + 127) // 128) * 128
    if V_pad != V:
        pv = V_pad - V
        x_p = jnp.pad(x, ((0, 0), (0, 0), (0, pv)))
        w_p = jnp.pad(weight, ((0, 0), (0, 0), (0, pv)))
        b_p = jnp.pad(bias, ((0, 0), (0, pv)))
        g_p = jnp.pad(g_t, ((0, 0), (0, pv)))
    else:
        x_p, w_p, b_p, g_p = x, weight, bias, g_t

    # --- tiling / VMEM budgeting (per-generation physical VMEM) -------------
    vmem_cap = _physical_vmem_bytes()          # 64 MiB v7x, 128 MiB v5e/v6e
    vmem_limit = int(0.75 * vmem_cap)          # explicit scoped VMEM limit
    budget = int(0.6 * vmem_limit)             # resident-block budget

    io_bytes = x.dtype.itemsize
    v_tile = _pick_v_tile(V_pad)
    b_tile = _pick_b_tile(B, L, v_tile, io_bytes, budget)

    n_v = V_pad // v_tile
    n_b = B // b_tile
    # v7x megacore: if the whole problem would be a single grid step, split
    # the batch so the second TensorCore has a parallel block to work on.
    if n_v == 1 and n_b == 1 and B > 1:
        for d in range(b_tile - 1, 0, -1):
            if B % d == 0:
                b_tile = d
                n_b = B // b_tile
                break

    # bf16 products (with f32 accumulation) only where the VPU supports bf16
    # natively (v6e / v7x); otherwise compute fully in f32.
    use_bf16_mul = (x.dtype == jnp.bfloat16) and not _is_v5e()
    mul_dtype = jnp.bfloat16 if use_bf16_mul else jnp.float32

    kernel = functools.partial(gcm_kernel, mul_dtype=mul_dtype,
                               unroll_static=(L <= 32))

    # Grid: V-tiles outer, batch innermost -> weight/bias/gating block index
    # is constant across the inner batch sweep (kept resident, no re-DMA).
    out = pl.pallas_call(
        kernel,
        out_shape=jax.ShapeDtypeStruct((B, L, V_pad), x.dtype),
        grid_spec=pl.GridSpec(
            grid=(n_v, n_b),
            in_specs=[
                pl.BlockSpec((b_tile, L, v_tile), lambda vi, bi: (bi, 0, vi)),
                pl.BlockSpec((L, L, v_tile), lambda vi, bi: (0, 0, vi)),
                pl.BlockSpec((L, v_tile), lambda vi, bi: (0, vi)),
                pl.BlockSpec((1, v_tile), lambda vi, bi: (0, vi)),
            ],
            out_specs=pl.BlockSpec((b_tile, L, v_tile),
                                   lambda vi, bi: (bi, 0, vi)),
        ),
        compiler_params=pltpu.CompilerParams(
            dimension_semantics=("parallel", "parallel"),
            vmem_limit_bytes=vmem_limit),
    )(x_p, w_p, b_p, g_p)

    return out[:, :, :V] if V_pad != V else out


def gcm_reference(x, weight, gating, bias):
    # Pure-JAX reference mirroring the PyTorch forward (var_wise=True).
    y = jnp.einsum("biv,iov->bov", x, weight) + bias[None, :, :]
    return x + jnp.tanh(gating)[None, None, :] * y


if __name__ == "__main__":
    B, window_len, n_var = 2, 8, 4

    key = jax.random.PRNGKey(0)
    kx, kw, kb = jax.random.split(key, 3)

    x = jax.random.normal(kx, (B, window_len, n_var), dtype=jnp.float32)
    # Module parameters: weight is zero-initialized in __init__; use small
    # random values here so the contraction path is actually exercised.
    weight = 0.1 * jax.random.normal(
        kw, (window_len, window_len, n_var), dtype=jnp.float32)
    gating = 0.01 * jnp.ones((n_var,), dtype=jnp.float32)   # gating_init=0.01
    bias = 0.1 * jax.random.normal(kb, (window_len, n_var), dtype=jnp.float32)

    out = gcm_forward(x, weight, gating, bias)
    out = jax.block_until_ready(out)

    ref = gcm_reference(x, weight, gating, bias)
    assert out.shape == (B, window_len, n_var)
    np.testing.assert_allclose(np.asarray(out), np.asarray(ref),
                               rtol=1e-5, atol=1e-5)
    print("KERNEL_OK")
</pallas_src>

<mosaic_0001>
module attributes {stable_mosaic.version = 11 : i64} {
  func.func @gcm_kernel(%arg0: i32, %arg1: i32, %arg2: memref<1x8x128xf32, #tpu.memory_space<vmem>>, %arg3: memref<8x8x128xf32, #tpu.memory_space<vmem>>, %arg4: memref<8x128xf32, #tpu.memory_space<vmem>>, %arg5: memref<1x128xf32, #tpu.memory_space<vmem>>, %arg6: memref<1x8x128xf32, #tpu.memory_space<vmem>>) attributes {dimension_semantics = [#tpu.dimension_semantics<parallel>, #tpu.dimension_semantics<parallel>], iteration_bounds = array<i64: 1, 2>, scalar_prefetch = 0 : i64, scratch_operands = 0 : i64, tpu.core_type = #tpu.core_type<tc>, window_params = [{transform_indices = @transform_0, window_bounds = array<i64: 1, 8, 128>}, {transform_indices = @transform_1, window_bounds = array<i64: 8, 8, 128>}, {transform_indices = @transform_2, window_bounds = array<i64: 8, 128>}, {transform_indices = @transform_3, window_bounds = array<i64: 1, 128>}, {transform_indices = @transform_4, window_bounds = array<i64: 1, 8, 128>}]} {
    %cst = arith.constant 0.000000e+00 : f32
    %0 = vector.broadcast %cst : f32 to vector<1x8x128xf32>
    %c0 = arith.constant 0 : index
    %c0_0 = arith.constant 0 : index
    %c0_1 = arith.constant 0 : index
    %1 = vector.load %arg2[%c0, %c0_0, %c0_1] : memref<1x8x128xf32, #tpu.memory_space<vmem>>, vector<1x1x128xf32>
    %c0_2 = arith.constant 0 : index
    %c0_3 = arith.constant 0 : index
    %c0_4 = arith.constant 0 : index
    %2 = vector.load %arg3[%c0_2, %c0_3, %c0_4] : memref<8x8x128xf32, #tpu.memory_space<vmem>>, vector<1x8x128xf32>
    %3 = vector.shape_cast %2 : vector<1x8x128xf32> to vector<8x128xf32>
    %4 = vector.shape_cast %3 : vector<8x128xf32> to vector<1x8x128xf32>
    %5 = vector.broadcast %1 : vector<1x1x128xf32> to vector<1x8x128xf32>
    %6 = arith.mulf %5, %4 : vector<1x8x128xf32>
    %7 = arith.addf %0, %6 : vector<1x8x128xf32>
    %c0_5 = arith.constant 0 : index
    %c1 = arith.constant 1 : index
    %c0_6 = arith.constant 0 : index
    %8 = vector.load %arg2[%c0_5, %c1, %c0_6] : memref<1x8x128xf32, #tpu.memory_space<vmem>>, vector<1x1x128xf32>
    %c1_7 = arith.constant 1 : index
    %c0_8 = arith.constant 0 : index
    %c0_9 = arith.constant 0 : index
    %9 = vector.load %arg3[%c1_7, %c0_8, %c0_9] : memref<8x8x128xf32, #tpu.memory_space<vmem>>, vector<1x8x128xf32>
    %10 = vector.shape_cast %9 : vector<1x8x128xf32> to vector<8x128xf32>
    %11 = vector.shape_cast %10 : vector<8x128xf32> to vector<1x8x128xf32>
    %12 = vector.broadcast %8 : vector<1x1x128xf32> to vector<1x8x128xf32>
    %13 = arith.mulf %12, %11 : vector<1x8x128xf32>
    %14 = arith.addf %7, %13 : vector<1x8x128xf32>
    %c0_10 = arith.constant 0 : index
    %c2 = arith.constant 2 : index
    %c0_11 = arith.constant 0 : index
    %15 = vector.load %arg2[%c0_10, %c2, %c0_11] : memref<1x8x128xf32, #tpu.memory_space<vmem>>, vector<1x1x128xf32>
    %c2_12 = arith.constant 2 : index
    %c0_13 = arith.constant 0 : index
    %c0_14 = arith.constant 0 : index
    %16 = vector.load %arg3[%c2_12, %c0_13, %c0_14] : memref<8x8x128xf32, #tpu.memory_space<vmem>>, vector<1x8x128xf32>
    %17 = vector.shape_cast %16 : vector<1x8x128xf32> to vector<8x128xf32>
    %18 = vector.shape_cast %17 : vector<8x128xf32> to vector<1x8x128xf32>
    %19 = vector.broadcast %15 : vector<1x1x128xf32> to vector<1x8x128xf32>
    %20 = arith.mulf %19, %18 : vector<1x8x128xf32>
    %21 = arith.addf %14, %20 : vector<1x8x128xf32>
    %c0_15 = arith.constant 0 : index
    %c3 = arith.constant 3 : index
    %c0_16 = arith.constant 0 : index
    %22 = vector.load %arg2[%c0_15, %c3, %c0_16] : memref<1x8x128xf32, #tpu.memory_space<vmem>>, vector<1x1x128xf32>
    %c3_17 = arith.constant 3 : index
    %c0_18 = arith.constant 0 : index
    %c0_19 = arith.constant 0 : index
    %23 = vector.load %arg3[%c3_17, %c0_18, %c0_19] : memref<8x8x128xf32, #tpu.memory_space<vmem>>, vector<1x8x128xf32>
    %24 = vector.shape_cast %23 : vector<1x8x128xf32> to vector<8x128xf32>
    %25 = vector.shape_cast %24 : vector<8x128xf32> to vector<1x8x128xf32>
    %26 = vector.broadcast %22 : vector<1x1x128xf32> to vector<1x8x128xf32>
    %27 = arith.mulf %26, %25 : vector<1x8x128xf32>
    %28 = arith.addf %21, %27 : vector<1x8x128xf32>
    %c0_20 = arith.constant 0 : index
    %c4 = arith.constant 4 : index
    %c0_21 = arith.constant 0 : index
    %29 = vector.load %arg2[%c0_20, %c4, %c0_21] : memref<1x8x128xf32, #tpu.memory_space<vmem>>, vector<1x1x128xf32>
    %c4_22 = arith.constant 4 : index
    %c0_23 = arith.constant 0 : index
    %c0_24 = arith.constant 0 : index
    %30 = vector.load %arg3[%c4_22, %c0_23, %c0_24] : memref<8x8x128xf32, #tpu.memory_space<vmem>>, vector<1x8x128xf32>
    %31 = vector.shape_cast %30 : vector<1x8x128xf32> to vector<8x128xf32>
    %32 = vector.shape_cast %31 : vector<8x128xf32> to vector<1x8x128xf32>
    %33 = vector.broadcast %29 : vector<1x1x128xf32> to vector<1x8x128xf32>
    %34 = arith.mulf %33, %32 : vector<1x8x128xf32>
    %35 = arith.addf %28, %34 : vector<1x8x128xf32>
    %c0_25 = arith.constant 0 : index
    %c5 = arith.constant 5 : index
    %c0_26 = arith.constant 0 : index
    %36 = vector.load %arg2[%c0_25, %c5, %c0_26] : memref<1x8x128xf32, #tpu.memory_space<vmem>>, vector<1x1x128xf32>
    %c5_27 = arith.constant 5 : index
    %c0_28 = arith.constant 0 : index
    %c0_29 = arith.constant 0 : index
    %37 = vector.load %arg3[%c5_27, %c0_28, %c0_29] : memref<8x8x128xf32, #tpu.memory_space<vmem>>, vector<1x8x128xf32>
    %38 = vector.shape_cast %37 : vector<1x8x128xf32> to vector<8x128xf32>
    %39 = vector.shape_cast %38 : vector<8x128xf32> to vector<1x8x128xf32>
    %40 = vector.broadcast %36 : vector<1x1x128xf32> to vector<1x8x128xf32>
    %41 = arith.mulf %40, %39 : vector<1x8x128xf32>
    %42 = arith.addf %35, %41 : vector<1x8x128xf32>
    %c0_30 = arith.constant 0 : index
    %c6 = arith.constant 6 : index
    %c0_31 = arith.constant 0 : index
    %43 = vector.load %arg2[%c0_30, %c6, %c0_31] : memref<1x8x128xf32, #tpu.memory_space<vmem>>, vector<1x1x128xf32>
    %c6_32 = arith.constant 6 : index
    %c0_33 = arith.constant 0 : index
    %c0_34 = arith.constant 0 : index
    %44 = vector.load %arg3[%c6_32, %c0_33, %c0_34] : memref<8x8x128xf32, #tpu.memory_space<vmem>>, vector<1x8x128xf32>
    %45 = vector.shape_cast %44 : vector<1x8x128xf32> to vector<8x128xf32>
    %46 = vector.shape_cast %45 : vector<8x128xf32> to vector<1x8x128xf32>
    %47 = vector.broadcast %43 : vector<1x1x128xf32> to vector<1x8x128xf32>
    %48 = arith.mulf %47, %46 : vector<1x8x128xf32>
    %49 = arith.addf %42, %48 : vector<1x8x128xf32>
    %c0_35 = arith.constant 0 : index
    %c7 = arith.constant 7 : index
    %c0_36 = arith.constant 0 : index
    %50 = vector.load %arg2[%c0_35, %c7, %c0_36] : memref<1x8x128xf32, #tpu.memory_space<vmem>>, vector<1x1x128xf32>
    %c7_37 = arith.constant 7 : index
    %c0_38 = arith.constant 0 : index
    %c0_39 = arith.constant 0 : index
    %51 = vector.load %arg3[%c7_37, %c0_38, %c0_39] : memref<8x8x128xf32, #tpu.memory_space<vmem>>, vector<1x8x128xf32>
    %52 = vector.shape_cast %51 : vector<1x8x128xf32> to vector<8x128xf32>
    %53 = vector.shape_cast %52 : vector<8x128xf32> to vector<1x8x128xf32>
    %54 = vector.broadcast %50 : vector<1x1x128xf32> to vector<1x8x128xf32>
    %55 = arith.mulf %54, %53 : vector<1x8x128xf32>
    %56 = arith.addf %49, %55 : vector<1x8x128xf32>
    %c0_40 = arith.constant 0 : index
    %c0_41 = arith.constant 0 : index
    %c0_42 = arith.constant 0 : index
    %57 = vector.load %arg2[%c0_40, %c0_41, %c0_42] : memref<1x8x128xf32, #tpu.memory_space<vmem>>, vector<1x8x128xf32>
    %c0_43 = arith.constant 0 : index
    %c0_44 = arith.constant 0 : index
    %58 = vector.load %arg5[%c0_43, %c0_44] : memref<1x128xf32, #tpu.memory_space<vmem>>, vector<1x128xf32>
    %c0_45 = arith.constant 0 : index
    %c0_46 = arith.constant 0 : index
    %59 = vector.load %arg4[%c0_45, %c0_46] : memref<8x128xf32, #tpu.memory_space<vmem>>, vector<8x128xf32>
    %60 = vector.shape_cast %58 : vector<1x128xf32> to vector<1x1x128xf32>
    %61 = vector.shape_cast %59 : vector<8x128xf32> to vector<1x8x128xf32>
    %62 = arith.addf %56, %61 : vector<1x8x128xf32>
    %63 = vector.broadcast %60 : vector<1x1x128xf32> to vector<1x8x128xf32>
    %64 = arith.mulf %63, %62 : vector<1x8x128xf32>
    %65 = arith.addf %57, %64 : vector<1x8x128xf32>
    %c0_47 = arith.constant 0 : index
    %c0_48 = arith.constant 0 : index
    %c0_49 = arith.constant 0 : index
    %66 = vector.load %arg6[%c0_47, %c0_48, %c0_49] : memref<1x8x128xf32, #tpu.memory_space<vmem>>, vector<1x8x128xf32>
    tpu.vector_store %arg6[%c0_47, %c0_48, %c0_49], %65 {strides = array<i32>} : memref<1x8x128xf32, #tpu.memory_space<vmem>>, vector<1x8x128xf32>,
    return
  }
  func.func @transform_0(%arg0: i32, %arg1: i32) -> (i32, i32, i32) {
    %c0_i32 = arith.constant 0 : i32
    %c0_i32_0 = arith.constant 0 : i32
    return %arg1, %c0_i32, %arg0 : i32, i32, i32
  }
  func.func @transform_1(%arg0: i32, %arg1: i32) -> (i32, i32, i32) {
    %c0_i32 = arith.constant 0 : i32
    %c0_i32_0 = arith.constant 0 : i32
    %c0_i32_1 = arith.constant 0 : i32
    return %c0_i32, %c0_i32_0, %arg0 : i32, i32, i32
  }
  func.func @transform_2(%arg0: i32, %arg1: i32) -> (i32, i32) {
    %c0_i32 = arith.constant 0 : i32
    %c0_i32_0 = arith.constant 0 : i32
    return %c0_i32, %arg0 : i32, i32
  }
  func.func @transform_3(%arg0: i32, %arg1: i32) -> (i32, i32) {
    %c0_i32 = arith.constant 0 : i32
    %c0_i32_0 = arith.constant 0 : i32
    return %c0_i32, %arg0 : i32, i32
  }
  func.func @transform_4(%arg0: i32, %arg1: i32) -> (i32, i32, i32) {
    %c0_i32 = arith.constant 0 : i32
    %c0_i32_0 = arith.constant 0 : i32
    return %arg1, %c0_i32, %arg0 : i32, i32, i32
  }
}

</mosaic_0001>

<bundles_post_ra>
// kernel: tpu_custom_call.1
= control target key start
LH: loop header
LB: loop body
LE: loop exit
PB: predicated region body
PF: predicated region fallthrough
CT: control target
= control target key end

     0   :  { %9 = vsyncpa [#allocation3], 0  ;;  %s1084_s0 = inlined_call_operand.hbm [shape: f32[2,8,128], index: 0, kind: input, shape index: {}]   ;;  %s1085_s1 = inlined_call_operand.hbm [shape: f32[8,8,128], index: 1, kind: input, shape index: {}]   ;;  %s1086_s2 = inlined_call_operand.hbm [shape: f32[8,128], index: 2, kind: input, shape index: {}]   ;;  %s1087_s3 = inlined_call_operand.vmem [shape: f32[1,128], index: 3, kind: input, shape index: {}]   ;;  %s1088_s4 = inlined_call_operand.hbm [shape: f32[2,8,128], index: 4, kind: output, shape index: {}]  }
   0x1   :  { %11 = vsyncpa [#allocation3 + $0x1], 0 }
   0x2   :  { %12 = vsyncpa [#allocation6], 0 }
   0x3   :  { %13 = vsyncpa [#allocation4], 0 }
   0x4   :  { %15 = vsyncpa [#allocation4 + $0x1], 0  ;;  %s816_s15 = smov 0   ;;  %s818_s16 = smov 0  }
   0x5   :  { %s820_s17 = smov 0   ;;  %s822_s18 = smov 0  }
   0x6   :  { %s824_s19 = smov 0   ;;  %s826_s20 = smov 0  }
   0x7 LB: > { %s499_s21 = sadd.s32 4294967295, %s783_s20   ;;  %s500_s22 = sadd.s32 4294967294, %s783_s20   ;;  %s783_s20 = sphi %s826_s20, %s21_s20   ;;  %s779_s19 = sphi %s824_s19, %s1110_s19   ;;  %s775_s18 = sphi %s822_s18, %s1109_s18   ;;  %s771_s17 = sphi %s820_s17, %s1108_s17   ;;  %s767_s16 = sphi %s818_s16, %s1107_s16   ;;  %s763_s15 = sphi %s816_s15, %s1106_s15  }
   0x8   : > { %p55_p0 = scmp.ne.s32.totalorder %s767_s16, %s763_s15  ;;  %p850_p1 = scmp.eq.s32.totalorder %s499_s21, 0 }
   0x9   : > { %p854_p2 = scmp.eq.s32.totalorder %s499_s21, 1  ;;  %p165_p3 = scmp.eq.s32.totalorder %s500_s22, 1 }
   0xa   : > { %s1093_s23 = scalar_select %p850_p1, 1, 0 }
   0xb   : > { %p860_p4 = por %p850_p1, %p55_p0  ;;  %p501_p5 = scmp.ge.s32.totalorder %s783_s20, 1 }
   0xc   : > { %p865_p6 = por %p165_p3, %p55_p0  ;;  %p172_p7 = scmp.lt.s32.totalorder %s783_s20, 3 }
   0xd   : > { %s1095_s25 = scalar_select %p860_p4, 1, 0 }
   0xe   : > { %s1096_s26 = scalar_select %p865_p6, 1, 0 }
   0xf   : > { %p870_p8 = pnand %p501_p5, %p172_p7  ;;  %s785_s28 = smov [#allocation5]  }
  0x10   : > { %s186_s29 = sshll.u32 %s785_s28, 4  ;;  %s786_s5 = smov [#allocation7]   ;;  %s874_s29 = int_to_ptr.vmem [resolvable:$true] %s186_s29 }
  0x11   : > { %p538_p9 = pneg %p870_p8  ;;  %s202_s6 = sshll.u32 %s786_s5, 4  ;;  %s885_s6 = int_to_ptr.vmem [resolvable:$true] %s202_s6 }
  0x12   : > { %s611_s9 = scalar_lea.hbm %s1085_s1, 1024 }
  0x13   : > { %p881_p11 = pnand %p538_p9, %p850_p1  ;;  %p612_p12 = scmp.ne.s32.totalorder %s1085_s1, %s611_s9 }
  0x14   : > { %p618_p5 = scmp.lt.u32.totalorder %s611_s9, %s1085_s1 }
  0x15   : > { %p613_p13 = pneg %p881_p11 }
  0x17   : > { %p614_p0 = pnand %p613_p13, %p612_p12 }
  0x19   : > { %p615_p3 = pneg %p614_p0 }
  0x1b   : > { %p620_p7 = pnand %p618_p5, %p615_p3 }
  0x1d   : > { %623 = shalt.err (!%p620_p7)
}
  0x1e   : > { %s624_s14 = scalar_lea.vmem %s874_s29, 1024  ;;  %p632_p1 = scmp.lt.s32.totalorder %s874_s29, %s874_s29 }
  0x1f   : > { %p625_p9 = scmp.ne.s32.totalorder %s874_s29, %s624_s14  ;;  %p633_p12 = scmp.lt.s32.totalorder %s624_s14, %s624_s14 }
  0x21   : > { %p627_p10 = pnand %p625_p9, %p613_p13  ;;  %p634_p0 = por %p633_p12, %p632_p1 }
  0x23   : > { %p628_p6 = pneg %p627_p10 }
  0x25   : > { %p635_p4 = pnand %p634_p0, %p628_p6 }
  0x27   : > { %638 = shalt.err (!%p635_p4)
}
  0x28   : > { %s787_s21 = smov 128   ;;  %s788_s22 = smov 8  }
  0x29   : > { %541 = dma.hbm_to_vmem [thread:$0]  (!%p881_p11), %s1085_s1, 1024, %s874_s29, [#allocation6], %s787_s21, %s787_s21, %s788_s22  }
  0x2a   : > { %s639_s9 = scalar_lea.hbm %s1086_s2, 128 }
  0x2b   : > { %p640_p1 = scmp.ne.s32.totalorder %s1086_s2, %s639_s9  ;;  %p646_p10 = scmp.lt.u32.totalorder %s639_s9, %s1086_s2 }
  0x2d   : > { %p642_p4 = pnand %p640_p1, %p613_p13 }
  0x2f   : > { %p643_p6 = pneg %p642_p4 }
  0x31   : > { %p648_p3 = pnand %p646_p10, %p643_p6 }
  0x33   : > { %651 = shalt.err (!%p648_p3)
}
  0x34   : > { %s652_s29 = scalar_lea.vmem %s885_s6, 128  ;;  %p660_p12 = scmp.lt.s32.totalorder %s885_s6, %s885_s6 }
  0x35   : > { %p653_p5 = scmp.ne.s32.totalorder %s885_s6, %s652_s29  ;;  %p661_p0 = scmp.lt.s32.totalorder %s652_s29, %s652_s29 }
  0x37   : > { %p655_p7 = pnand %p653_p5, %p613_p13  ;;  %p662_p1 = por %p661_p0, %p660_p12 }
  0x39   : > { %p656_p9 = pneg %p655_p7 }
  0x3b   : > { %p663_p4 = pnand %p662_p1, %p656_p9 }
  0x3d   : > { %666 = shalt.err (!%p663_p4)
}
  0x3e   : > { %544 = dma.hbm_to_vmem [thread:$0]  (!%p881_p11), %s1086_s2, 128, %s885_s6, [#allocation6]  }
  0x3f   : > { %s30_s22 = sadd.s32 1, %s779_s19  ;;  %s42_s28 = sadd.s32 1, %s771_s17 }
  0x40   : > { %p31_p13 = scmp.ge.s32.totalorder %s30_s22, 2  ;;  %p49_p6 = scmp.ne.s32.totalorder %s771_s17, %s767_s16 }
  0x41   : > { %p50_p10 = scmp.eq.s32.totalorder %s783_s20, 0  ;;  %p555_p3 = scmp.lt.s32.totalorder %s783_s20, 2 }
  0x42   : > { %s1112_s22 = smov (%p31_p13, %s30_s22), 0  ;;  %p949_p7 = por %p854_p2, %p49_p6 }
  0x43   : > { %p51_p5 = por %p50_p10, %p49_p6  ;;  %s37_s5 = ssub.s32 %s779_s19, %s1112_s22 }
  0x44   : > { %s1099_s30 = scalar_select %p949_p7, 1, 0 }
  0x45   : > { %s219_s7 = sand.u32 1, %s771_s17   ;;  %p40_p9 = scmp.eq.s32.totalorder %s37_s5, 0 }
  0x46   : > { %s506_s6 = sshll.u32 %s219_s7, 3  ;;  %s507_s8 = sshll.u32 %s779_s19, 7 }
  0x47   : > { %s958_s9 = scalar_select %p40_p9, %s771_s17, %s42_s28  }
  0x48   : > { %s963_s12 = scalar_lea.hbm %s1084_s0, %s507_s8  ;;  %s223_s24 = scalar_lea.vmem [#allocation2], %s506_s6 }
  0x49   : > { %s231_s13 = sshll.u32 %s223_s24, 4  ;;  %p967_p2 = pnand %p555_p3, %p51_p5  ;;  %s971_s13 = int_to_ptr.vmem [resolvable:$true] %s231_s13 }
  0x4a   : > { %s220_s14 = scalar_lea.sflag [#allocation3], %s219_s7  ;;  %s667_s21 = scalar_lea.hbm %s963_s12, 128 }
  0x4b   : > { %p668_p11 = scmp.ne.s32.totalorder %s963_s12, %s667_s21  ;;  %p669_p12 = pneg %p967_p2 }
  0x4c   : > { %s672_s6 = scalar_lea.hbm %s1084_s0, 256  ;;  %p673_p4 = scmp.lt.u32.totalorder %s963_s12, %s1084_s0 }
  0x4d   : > { %p670_p0 = pnand %p669_p12, %p668_p11  ;;  %p674_p13 = scmp.lt.u32.totalorder %s672_s6, %s667_s21 }
  0x4e   : > { %p676_p10 = scmp.lt.u32.totalorder %s667_s21, %s963_s12 }
  0x4f   : > { %p671_p1 = pneg %p670_p0  ;;  %p675_p6 = por %p674_p13, %p673_p4 }
  0x51   : > { %p677_p3 = por %p676_p10, %p675_p6 }
  0x53   : > { %p678_p5 = pnand %p677_p3, %p671_p1 }
  0x55   : > { %681 = shalt.err (!%p678_p5)
}
  0x56   : > { %s682_s7 = scalar_lea.vmem %s971_s13, 128  ;;  %s789_s11 = smov [#allocation2]  }
  0x57   : > { %p683_p9 = scmp.ne.s32.totalorder %s971_s13, %s682_s7  ;;  %s687_s24 = sshll.u32 %s789_s11, 4  ;;  %s688_s24 = int_to_ptr.vmem [resolvable:$false] %s687_s24 }
  0x58   : > { %s689_s28 = scalar_lea.vmem %s688_s24, 256  ;;  %p690_p7 = scmp.lt.s32.totalorder %s971_s13, %s688_s24 }
  0x59   : > { %p685_p11 = pnand %p683_p9, %p669_p12  ;;  %p691_p4 = scmp.lt.s32.totalorder %s689_s28, %s682_s7 }
  0x5b   : > { %p686_p0 = pneg %p685_p11  ;;  %p692_p13 = por %p691_p4, %p690_p7 }
  0x5d   : > { %p693_p6 = pnand %p692_p13, %p686_p0 }
  0x5f   : > { %696 = shalt.err (!%p693_p6)
}
  0x60   : > { %548 = dma.hbm_to_vmem [thread:$0]  (!%p967_p2), %s963_s12, 128, %s971_s13, %s220_s14  }
  0x61   : > { %240 = sbr.rel (%p870_p8) target bundleno = 146 (0x92), region = 36  ;;  %s1001_s21 = sand.u32 (!%p870_p8), 1, %s767_s16  }
  0x62   : > { %s509_s5 = sshll.u32 (!%p870_p8), %s1001_s21, 3  ;;  %s243_s6 = scalar_lea.sflag (!%p870_p8), [#allocation3], %s1001_s21 }
  0x63   : > { %s1007_s8 = scalar_lea.vmem (!%p870_p8), [#allocation2], %s509_s5  ;;  %p1101_p7 = scmp.ne.s32.totalorder (!%p870_p8), %s1095_s25, 0 }
  0x68   : > { %750 = dma.done.wait (%p1101_p7), %s243_s6, 128  }
  0x69   : > { %752 = vsyncadd (%p1101_p7), %s243_s6, 4294967168  ;;  %p1102_p2 = scmp.ne.s32.totalorder %s1093_s23, 0 }
  0x6b   : > { %754 = dma.done.wait (%p1102_p2), [#allocation6], 1152  }
  0x6c   : > { %756 = vsyncadd (%p1102_p2), [#allocation6], 4294966144  ;;  %v513_v0 = vld [vmem:[%s1007_s8] ss:$0 sm:$0xff]  ;;  %v286_v1 = vld [vmem:[#allocation5] sm:$0xff]  ;;  %s281_s27 = scalar_lea.vmem [#allocation8], %s509_s5 }
  0x6d   : > { %v514_v2 = vld [vmem:[%s1007_s8 + $0x1] ss:$0 sm:$0xff]  ;;  %v291_v3 = vmul.f32 %v513_v0, %v286_v1  ;;  %v295_v4 = vld [vmem:[#allocation5 + $0x8] sm:$0xff]  ;;  %v515_v5 = vld [vmem:[%s1007_s8 + $0x2] ss:$0 sm:$0xff]  ;;  %s384_s12 = sshll.u32 %s281_s27, 4  ;;  %s1032_s12 = int_to_ptr.vmem [resolvable:$true] %s384_s12 }
  0x6e   : > { %v304_v6 = vld [vmem:[#allocation5 + $0x10] sm:$0xff]  ;;  %v300_v7 = vmul.f32 %v514_v2, %v295_v4  ;;  %v313_v10 = vld [vmem:[#allocation5 + $0x18] sm:$0xff]  ;;  %v322_v12 = vld [vmem:[#allocation5 + $0x20] sm:$0xff]  ;;  %s523_s13 = sshll.u32 %s775_s18, 7  ;;  %s370_s7 = scalar_lea.sflag [#allocation4], %s1001_s21 }
  0x6f   : > { %v309_v8 = vmul.f32 %v515_v5, %v304_v6  ;;  %v516_v9 = vld [vmem:[%s1007_s8 + $0x3] ss:$0 sm:$0xff]  ;;  %v517_v11 = vld [vmem:[%s1007_s8 + $0x4] ss:$0 sm:$0xff]  ;;  %v518_v15 = vld [vmem:[%s1007_s8 + $0x5] ss:$0 sm:$0xff]  ;;  %s1037_s10 = scalar_lea.hbm %s1088_s4, %s523_s13 }
  0x70   : > { %v301_v13 = vadd.f32 %v300_v7, %v291_v3  ;;  %v318_v14 = vmul.f32 %v516_v9, %v313_v10  ;;  %v331_v16 = vld [vmem:[#allocation5 + $0x28] sm:$0xff]  ;;  %v327_v18 = vmul.f32 %v517_v11, %v322_v12  ;;  %v519_v19 = vld [vmem:[%s1007_s8 + $0x6] ss:$0 sm:$0xff]  ;;  %v520_v23 = vld [vmem:[%s1007_s8 + $0x7] ss:$0 sm:$0xff]  ;;  %s697_s11 = scalar_lea.vmem %s1032_s12, 128 }
  0x71   : > { %v340_v20 = vld [vmem:[#allocation5 + $0x30] sm:$0xff]  ;;  %v336_v22 = vmul.f32 %v518_v15, %v331_v16  ;;  %v349_v24 = vld [vmem:[#allocation5 + $0x38] sm:$0xff]  ;;  %v358_v30 = vld [vmem:[#allocation7] sm:$0xff]  ;;  %p698_p8 = scmp.ne.s32.totalorder %s1032_s12, %s697_s11  ;;  %p1103_p12 = scmp.ne.s32.totalorder %s1099_s30, 0 }
  0x72   : > { %v310_v17 = vadd.f32 %v309_v8, %v301_v13  ;;  %v345_v26 = vmul.f32 %v519_v19, %v340_v20  ;;  %v354_v28 = vmul.f32 %v520_v23, %v349_v24  ;;  %v521_v32 = vld [vmem:[%s1087_s3] ss:$0 sm:$0xff]  ;;  %s790_s18 = smov [#allocation8]  }
  0x73   : > { %v356_v34 = vld [vmem:[%s1007_s8] sm:$0xff]  ;;  %p699_p1 = pnand %p698_p8, %p1103_p12  ;;  %s701_s24 = sshll.u32 %s790_s18, 4  ;;  %s702_s24 = int_to_ptr.vmem [resolvable:$false] %s701_s24 }
  0x74   : > { %v319_v21 = vadd.f32 %v318_v14, %v310_v17  ;;  %s703_s28 = scalar_lea.vmem %s702_s24, 256  ;;  %p704_p3 = scmp.lt.s32.totalorder %s1032_s12, %s702_s24 }
  0x75   : > { %p700_p10 = pneg %p699_p1  ;;  %p705_p5 = scmp.lt.s32.totalorder %s703_s28, %s697_s11 }
  0x76   : > { %v328_v25 = vadd.f32 %v327_v18, %v319_v21 }
  0x77   : > { %p706_p9 = por %p705_p5, %p704_p3 }
  0x78   : > { %v337_v27 = vadd.f32 %v336_v22, %v328_v25 }
  0x79   : > { %p707_p11 = pnand %p706_p9, %p700_p10 }
  0x7a   : > { %v346_v29 = vadd.f32 %v345_v26, %v337_v27 }
  0x7c   : > { %v355_v31 = vadd.f32 %v354_v28, %v346_v29 }
  0x7e   : > { %v359_v33 = vadd.f32 %v358_v30, %v355_v31 }
  0x80   : > { %v366_v35 = vmul.f32 %v521_v32, %v359_v33 }
  0x82   : > { %v367_v36 = vadd.f32 %v366_v35, %v356_v34 }
  0x84   : > { %368 = vst [vmem:[%s281_s27] sm:$0xff] %v367_v36 }
  0x85   : > { %710 = shalt.err (!%p707_p11)
}
  0x86   : > { %s711_s21 = scalar_lea.hbm %s1037_s10, 128  ;;  %s715_s8 = scalar_lea.hbm %s1088_s4, 256 }
  0x87   : > { %p712_p0 = scmp.ne.s32.totalorder %s1037_s10, %s711_s21  ;;  %p716_p6 = scmp.lt.u32.totalorder %s1037_s10, %s1088_s4 }
  0x88   : > { %p717_p7 = scmp.lt.u32.totalorder %s715_s8, %s711_s21  ;;  %p719_p8 = scmp.lt.u32.totalorder %s711_s21, %s1037_s10 }
  0x89   : > { %p713_p4 = pnand %p712_p0, %p1103_p12 }
  0x8a   : > { %p718_p2 = por %p717_p7, %p716_p6 }
  0x8b   : > { %p714_p13 = pneg %p713_p4 }
  0x8c   : > { %p720_p1 = por %p719_p8, %p718_p2 }
  0x8e   : > { %p721_p10 = pnand %p720_p1, %p714_p13 }
  0x90   : > { %724 = shalt.err (!%p721_p10)
}
  0x91   : > { %536 = dma.vmem_to_hbm [thread:$0]  (%p1103_p12), %s1032_s12, 128, %s1037_s10, %s370_s7  }
  0x92 PF: > { %s396_s27 = sand.u32 1, %s763_s15   ;;  %p1104_p3 = scmp.ne.s32.totalorder %s1096_s26, 0 }
  0x93   : > { %p1105_p5 = scmp.ge.s32.totalorder %s783_s20, 2  ;;  %s397_s13 = scalar_lea.sflag [#allocation4], %s396_s27 }
  0x95   : > { %p550_p9 = pnand %p1105_p5, %p1104_p3 }
  0x97   : > { %758 = dma.done.wait (!%p550_p9), %s397_s13, 128  }
  0x98   : > { %760 = vsyncadd (!%p550_p9), %s397_s13, 4294967168  ;;  %s21_s20 = sadd.s32 1, %s783_s20   ;;  %s1106_s15 = smov %s767_s16 }
  0x99   : > { %p18_p11 = scmp.ge.s32.totalorder %s21_s20, 4   ;;  %s1107_s16 = smov %s771_s17 }
  0x9a   : > { %s1108_s17 = smov %s958_s9  ;;  %s1109_s18 = smov %s779_s19 }
  0x9b   : > { %s1110_s19 = smov %s1112_s22  ;;  %20 = sbr.rel (!%p18_p11) target bundleno = 7 (0x7), region = 101 }
  0xa2   :  { %402 = vsyncpa [#allocation3], 1 }
  0xa3   :  { %404 = vsyncpa [#allocation3 + $0x1], 1 }
  0xa4   :  { %405 = vsyncpa [#allocation6], 1 }
  0xa5   :  { %406 = vsyncpa [#allocation4], 1 }
  0xa6   :  { %408 = vsyncpa [#allocation4 + $0x1], 1 }

</bundles_post_ra>
